<compile_context>
chip_gen: v7x
topology: tpu7x:2x2x1
jax: 0.10.0
libtpu: 0.0.40
codegen_flags: <defaults>
</compile_context>

<pallas_src>
import jax
import jax.numpy as jnp
from jax import lax
from jax.experimental import pallas as pl
from jax.experimental.pallas import tpu as pltpu


def model_kernel(x_ref, w1_ref, b1_ref, w2_ref, b2_ref, w3_ref, b3_ref, o_ref):
    # x_ref:  (64, 64)     f32 VMEM     w1_ref: (64, 256)   bf16 VMEM   b1_ref: (1, 256) f32 VMEM
    # w2_ref: (256, 256)   bf16 VMEM    b2_ref: (1, 256)    f32 VMEM
    # w3_ref: (2, 64, 256) bf16 VMEM    b3_ref: (2,)        f32 SMEM
    # o_ref:  (1, 128)     f32 VMEM (lane-dense output slab; wrapper slices [:, :2])
    x = x_ref[...]

    # layer_one + ReLU: bf16 MXU operands, f32 accumulate, f32 bias/ReLU (VPU).
    h = jnp.dot(x.astype(jnp.bfloat16), w1_ref[...],
                preferred_element_type=jnp.float32) + b1_ref[...]
    h = jnp.maximum(h, 0.0)

    # layer_two + ReLU
    h = jnp.dot(h.astype(jnp.bfloat16), w2_ref[...],
                preferred_element_type=jnp.float32) + b2_ref[...]
    h = jnp.maximum(h, 0.0)                                   # (64, 256) f32

    # shape_outputs: flatten(64,256) -> 16384 and contract with each output row of W3.
    # Per-output-unit slice of w3 (cast fuses into the multiply) keeps vreg pressure low;
    # full f32 math so the same kernel is correct/fast on v5e (no bf16 VPU).
    s0 = jnp.sum(h * w3_ref[0].astype(jnp.float32)) + b3_ref[0]   # scalar
    s1 = jnp.sum(h * w3_ref[1].astype(jnp.float32)) + b3_ref[1]   # scalar

    lane = lax.broadcasted_iota(jnp.int32, (1, 128), 1)
    o_ref[...] = jnp.where(lane == 0, s0, jnp.where(lane == 1, s1, 0.0))


def prepare_params(w1, b1, w2, b2, w3, b3, *, H=64):
    """One-time parameter prep: bf16 weight casts + torch-flatten-order reshape of w3.

    Do NOT call this per forward pass; the whole point is to hoist these casts out of the
    hot path so the kernel's own DMA bytes are the only per-call HBM traffic.
    """
    return dict(
        w1=w1.astype(jnp.bfloat16),                            # (64, 256)
        b1=b1.reshape(1, -1).astype(jnp.float32),              # (1, 256)
        w2=w2.astype(jnp.bfloat16),                            # (256, 256)
        b2=b2.reshape(1, -1).astype(jnp.float32),              # (1, 256)
        w3=w3.reshape(2, H, 256).astype(jnp.bfloat16),         # (2, 64, 256) torch flatten order
        b3=b3.astype(jnp.float32),                             # (2,)
    )


@jax.jit
def model_forward(x, params):
    B, C, H, W = x.shape
    assert B == 1 and C == 1 and H == 64 and W == 64, "module fixes these dims via Linear(16384, 2)"

    x2d = x.reshape(B * C * H, W).astype(jnp.float32)          # (64, 64)

    vmem = pl.BlockSpec(memory_space=pltpu.MemorySpace.VMEM)
    smem = pl.BlockSpec(memory_space=pltpu.MemorySpace.SMEM)
    # ~10.6 MFLOP of matmul + ~0.24 MB of bytes moved (bf16 weights + f32 activations).
    cost = pl.CostEstimate(flops=10_600_000, transcendentals=0, bytes_accessed=241_000)

    out_pad = pl.pallas_call(
        model_kernel,
        out_shape=jax.ShapeDtypeStruct((1, 128), jnp.float32),
        in_specs=[vmem, vmem, vmem, vmem, vmem, vmem, smem],
        out_specs=vmem,
        cost_estimate=cost,
    )(x2d, params["w1"], params["b1"], params["w2"], params["b2"],
      params["w3"], params["b3"])

    return out_pad[:, :2]                                      # (1, 2)
    # TODO(synk): if this model is ever run with batch > 1, add a row-tiled grid with
    # constant-index weight BlockSpecs (weights VMEM-resident) and mark it "parallel"
    # so v7x's two TensorCores can split rows.


def init_linear(kw, kb, fan_in, fan_out):
    # PyTorch default nn.Linear init: U(-1/sqrt(fan_in), 1/sqrt(fan_in)).
    bound = 1.0 / float(fan_in) ** 0.5
    # stored as (in, out) so the kernel does x @ w (== x @ W.T in torch convention)
    w = jax.random.uniform(kw, (fan_in, fan_out), jnp.float32, -bound, bound)
    b = jax.random.uniform(kb, (fan_out,), jnp.float32, -bound, bound)
    return w, b


def reference_forward(x, w1, b1, w2, b2, w3, b3):
    B = x.shape[0]
    h = jnp.maximum(x.reshape(-1, 64) @ w1 + b1, 0.0)
    h = jnp.maximum(h @ w2 + b2, 0.0)
    flat = h.reshape(B, -1)                                    # (1, 16384)
    return flat @ w3.reshape(2, -1).T + b3


if __name__ == "__main__":
    key = jax.random.PRNGKey(0)
    kx, k1w, k1b, k2w, k2b, k3w, k3b = jax.random.split(key, 7)

    x = jax.random.uniform(kx, (1, 1, 64, 64), jnp.float32)    # like torch.rand(1,1,64,64)

    w1, b1 = init_linear(k1w, k1b, 64, 256)
    w2, b2 = init_linear(k2w, k2b, 256, 256)
    # final linear kept in torch (out, in) convention: (2, 16384)
    bound3 = 1.0 / float(16384) ** 0.5
    w3 = jax.random.uniform(k3w, (2, 16384), jnp.float32, -bound3, bound3)
    b3 = jax.random.uniform(k3b, (2,), jnp.float32, -bound3, bound3)

    # One-time prep (bf16 casts, reshapes) — hoisted out of the forward path.
    params = prepare_params(w1, b1, w2, b2, w3, b3, H=64)
    params = jax.tree_util.tree_map(jax.block_until_ready, params)

    out = model_forward(x, params)
    out = jax.block_until_ready(out)

    ref = reference_forward(x, w1, b1, w2, b2, w3, b3)
    assert out.shape == (1, 2)
    assert jnp.allclose(out, ref, rtol=2e-2, atol=2e-2), (out, ref)

    print("KERNEL_OK")
</pallas_src>

<mosaic_0001>
module attributes {stable_mosaic.version = 11 : i64} {
  func.func @model_kernel(%arg0: memref<64x64xf32, #tpu.memory_space<vmem>>, %arg1: memref<64x256xbf16, #tpu.memory_space<vmem>>, %arg2: memref<1x256xf32, #tpu.memory_space<vmem>>, %arg3: memref<256x256xbf16, #tpu.memory_space<vmem>>, %arg4: memref<1x256xf32, #tpu.memory_space<vmem>>, %arg5: memref<2x64x256xbf16, #tpu.memory_space<vmem>>, %arg6: memref<2xf32, #tpu.memory_space<smem>>, %arg7: memref<1x128xf32, #tpu.memory_space<vmem>>) attributes {dimension_semantics = [], scalar_prefetch = 0 : i64, scratch_operands = 0 : i64, tpu.core_type = #tpu.core_type<tc>} {
    %c0 = arith.constant 0 : index
    %c0_0 = arith.constant 0 : index
    %0 = vector.load %arg0[%c0, %c0_0] : memref<64x64xf32, #tpu.memory_space<vmem>>, vector<64x64xf32>
    %1 = arith.truncf %0 : vector<64x64xf32> to vector<64x64xbf16>
    %c0_1 = arith.constant 0 : index
    %c0_2 = arith.constant 0 : index
    %2 = vector.load %arg1[%c0_1, %c0_2] : memref<64x256xbf16, #tpu.memory_space<vmem>>, vector<64x256xbf16>
    %cst = arith.constant dense<0.000000e+00> : vector<64x256xf32>
    %3 = tpu.matmul %1, %2, %cst {dimension_numbers = #tpu.dot_dimension_numbers<[1], [0], [0], [1], [0, 0, 1, 1], [], []>} : vector<64x64xbf16>, vector<64x256xbf16>, vector<64x256xf32> -> vector<64x256xf32>
    %c0_3 = arith.constant 0 : index
    %c0_4 = arith.constant 0 : index
    %4 = vector.load %arg2[%c0_3, %c0_4] : memref<1x256xf32, #tpu.memory_space<vmem>>, vector<1x256xf32>
    %5 = vector.broadcast %4 : vector<1x256xf32> to vector<64x256xf32>
    %6 = arith.addf %3, %5 : vector<64x256xf32>
    %cst_5 = arith.constant 0.000000e+00 : f32
    %7 = vector.broadcast %cst_5 : f32 to vector<64x256xf32>
    %8 = arith.maximumf %6, %7 : vector<64x256xf32>
    %9 = arith.truncf %8 : vector<64x256xf32> to vector<64x256xbf16>
    %c0_6 = arith.constant 0 : index
    %c0_7 = arith.constant 0 : index
    %10 = vector.load %arg3[%c0_6, %c0_7] : memref<256x256xbf16, #tpu.memory_space<vmem>>, vector<256x256xbf16>
    %cst_8 = arith.constant dense<0.000000e+00> : vector<64x256xf32>
    %11 = tpu.matmul %9, %10, %cst_8 {dimension_numbers = #tpu.dot_dimension_numbers<[1], [0], [0], [1], [0, 0, 1, 1], [], []>} : vector<64x256xbf16>, vector<256x256xbf16>, vector<64x256xf32> -> vector<64x256xf32>
    %c0_9 = arith.constant 0 : index
    %c0_10 = arith.constant 0 : index
    %12 = vector.load %arg4[%c0_9, %c0_10] : memref<1x256xf32, #tpu.memory_space<vmem>>, vector<1x256xf32>
    %13 = vector.broadcast %12 : vector<1x256xf32> to vector<64x256xf32>
    %14 = arith.addf %11, %13 : vector<64x256xf32>
    %cst_11 = arith.constant 0.000000e+00 : f32
    %15 = vector.broadcast %cst_11 : f32 to vector<64x256xf32>
    %16 = arith.maximumf %14, %15 : vector<64x256xf32>
    %c0_12 = arith.constant 0 : index
    %c0_13 = arith.constant 0 : index
    %c0_14 = arith.constant 0 : index
    %17 = vector.load %arg5[%c0_12, %c0_13, %c0_14] : memref<2x64x256xbf16, #tpu.memory_space<vmem>>, vector<1x64x256xbf16>
    %18 = vector.shape_cast %17 : vector<1x64x256xbf16> to vector<64x256xbf16>
    %19 = arith.extf %18 : vector<64x256xbf16> to vector<64x256xf32>
    %20 = arith.mulf %16, %19 : vector<64x256xf32>
    %21 = vector.shape_cast %20 : vector<64x256xf32> to vector<1x64x256xf32>
    %cst_15 = arith.constant dense<0.000000e+00> : vector<1xf32>
    %22 = vector.multi_reduction <add>, %21, %cst_15 [1, 2] : vector<1x64x256xf32> to vector<1xf32>
    %23 = vector.shape_cast %22 : vector<1xf32> to vector<1x1x1xf32>
    %24 = vector.extract %23[0, 0, 0] : f32 from vector<1x1x1xf32>
    %c0_16 = arith.constant 0 : index
    %25 = memref.load %arg6[%c0_16] : memref<2xf32, #tpu.memory_space<smem>>
    %26 = arith.addf %24, %25 : f32
    %c1 = arith.constant 1 : index
    %c0_17 = arith.constant 0 : index
    %c0_18 = arith.constant 0 : index
    %27 = vector.load %arg5[%c1, %c0_17, %c0_18] : memref<2x64x256xbf16, #tpu.memory_space<vmem>>, vector<1x64x256xbf16>
    %28 = vector.shape_cast %27 : vector<1x64x256xbf16> to vector<64x256xbf16>
    %29 = arith.extf %28 : vector<64x256xbf16> to vector<64x256xf32>
    %30 = arith.mulf %16, %29 : vector<64x256xf32>
    %31 = vector.shape_cast %30 : vector<64x256xf32> to vector<1x64x256xf32>
    %cst_19 = arith.constant dense<0.000000e+00> : vector<1xf32>
    %32 = vector.multi_reduction <add>, %31, %cst_19 [1, 2] : vector<1x64x256xf32> to vector<1xf32>
    %33 = vector.shape_cast %32 : vector<1xf32> to vector<1x1x1xf32>
    %34 = vector.extract %33[0, 0, 0] : f32 from vector<1x1x1xf32>
    %c1_20 = arith.constant 1 : index
    %35 = memref.load %arg6[%c1_20] : memref<2xf32, #tpu.memory_space<smem>>
    %36 = arith.addf %34, %35 : f32
    %37 = tpu.iota {dimensions = array<i32: 1>} : vector<1x128xi32>
    %c0_i32 = arith.constant 0 : i32
    %38 = vector.broadcast %c0_i32 : i32 to vector<1x128xi32>
    %39 = arith.cmpi eq, %37, %38 : vector<1x128xi32>
    %c1_i32 = arith.constant 1 : i32
    %40 = vector.broadcast %c1_i32 : i32 to vector<1x128xi32>
    %41 = arith.cmpi eq, %37, %40 : vector<1x128xi32>
    %cst_21 = arith.constant 0.000000e+00 : f32
    %42 = vector.broadcast %36 : f32 to vector<1x128xf32>
    %43 = vector.broadcast %cst_21 : f32 to vector<1x128xf32>
    %44 = arith.select %41, %42, %43 : vector<1x128xi1>, vector<1x128xf32>
    %45 = vector.broadcast %26 : f32 to vector<1x128xf32>
    %46 = arith.select %39, %45, %44 : vector<1x128xi1>, vector<1x128xf32>
    %c0_22 = arith.constant 0 : index
    %c0_23 = arith.constant 0 : index
    %47 = vector.load %arg7[%c0_22, %c0_23] : memref<1x128xf32, #tpu.memory_space<vmem>>, vector<1x128xf32>
    tpu.vector_store %arg7[%c0_22, %c0_23], %46 {strides = array<i32>} : memref<1x128xf32, #tpu.memory_space<vmem>>, vector<1x128xf32>,
    return
  }
}

</mosaic_0001>

<bundles_post_ra>
// kernel: model_forward.1
= control target key start
LH: loop header
LB: loop body
LE: loop exit
PB: predicated region body
PF: predicated region fallthrough
CT: control target
= control target key end

     0   :  { %12 = vsyncpa [#allocation3], 0  ;;  %s1199_s0 = inlined_call_operand.hbm [shape: f32[64,64], index: 0, kind: input, shape index: {}]   ;;  %s1200_s1 = inlined_call_operand.hbm [shape: bf16[64,256], index: 1, kind: input, shape index: {}]   ;;  %s1201_s2 = inlined_call_operand.vmem [shape: f32[1,256], index: 2, kind: input, shape index: {}]   ;;  %s1202_s3 = inlined_call_operand.hbm [shape: bf16[256,256], index: 3, kind: input, shape index: {}]   ;;  %s1203_s4 = inlined_call_operand.vmem [shape: f32[1,256], index: 4, kind: input, shape index: {}]   ;;  %s1204_s5 = inlined_call_operand.hbm [shape: bf16[2,64,256], index: 5, kind: input, shape index: {}]   ;;  %s1205_s6 = inlined_call_operand.vmem [shape: f32[2], index: 6, kind: input, shape index: {}]   ;;  %s1206_s7 = inlined_call_operand.hbm [shape: f32[1,128], index: 7, kind: output, shape index: {}]  }
   0x1   :  { %13 = vsyncpa [#allocation7], 0 }
   0x2   :  { %14 = vsyncpa [#allocation10], 0 }
   0x3   :  { %15 = vsyncpa [#allocation5], 0 }
   0x4   :  { %16 = vsyncpa [#allocation4], 0  ;;  %s1013_s24 = smov [#allocation6]   ;;  %s1014_s26 = smov [#allocation2]  }
   0x5   :  { %s34_s25 = sshll.u32 %s1013_s24, 4  ;;  %s22_s27 = sshll.u32 %s1014_s26, 4  ;;  %s35_s25 = int_to_ptr.vmem [resolvable:$true] %s34_s25  ;;  %s1062_s27 = int_to_ptr.vmem [resolvable:$true] %s22_s27 }
   0x6   :  { %s881_s30 = scalar_lea.hbm %s1200_s1, 1024 }
   0x7   :  { %p882_p0 = scmp.ne.s32.totalorder %s1200_s1, %s881_s30  ;;  %p885_p1 = scmp.lt.u32.totalorder %s881_s30, %s1200_s1 }
   0x9   :  { %p887_p2 = pnand %p885_p1, %p882_p0 }
   0xb   :  { %890 = shalt.err (!%p887_p2)
}
   0xc   :  { %s891_s12 = scalar_lea.vmem %s35_s25, 1024  ;;  %p896_p4 = scmp.lt.s32.totalorder %s35_s25, %s35_s25 }
   0xd   :  { %p892_p3 = scmp.ne.s32.totalorder %s35_s25, %s891_s12  ;;  %p897_p5 = scmp.lt.s32.totalorder %s891_s12, %s891_s12 }
   0xf   :  { %p898_p6 = por %p897_p5, %p896_p4 }
  0x11   :  { %p899_p7 = pnand %p898_p6, %p892_p3 }
  0x13   :  { %902 = shalt.err (!%p899_p7)
}
  0x14   :  { %s1015_s13 = smov 128   ;;  %s1016_s14 = smov 8  }
  0x15   :  { %40 = dma.hbm_to_vmem [thread:$0]  %s1200_s1, 1024, %s35_s25, [#allocation7], %s1015_s13, %s1015_s13, %s1016_s14  }
  0x16   :  { %s903_s19 = scalar_lea.hbm %s1199_s0, 1024 }
  0x17   :  { %p904_p8 = scmp.ne.s32.totalorder %s1199_s0, %s903_s19  ;;  %p907_p9 = scmp.lt.u32.totalorder %s903_s19, %s1199_s0 }
  0x19   :  { %p909_p10 = pnand %p907_p9, %p904_p8 }
  0x1b   :  { %912 = shalt.err (!%p909_p10)
}
  0x1c   :  { %s913_s24 = scalar_lea.vmem %s1062_s27, 1024  ;;  %p918_p12 = scmp.lt.s32.totalorder %s1062_s27, %s1062_s27 }
  0x1d   :  { %p914_p11 = scmp.ne.s32.totalorder %s1062_s27, %s913_s24  ;;  %p919_p13 = scmp.lt.s32.totalorder %s913_s24, %s913_s24 }
  0x1f   :  { %p920_p0 = por %p919_p13, %p918_p12 }
  0x21   :  { %p921_p1 = pnand %p920_p0, %p914_p11 }
  0x23   :  { %924 = shalt.err (!%p921_p1)
}
  0x24   :  { %28 = dma.hbm_to_vmem [thread:$0]  %s1199_s0, 1024, %s1062_s27, [#allocation3], %s1015_s13, %s1015_s13, %s1016_s14  }
  0x25   :  { %s1017_s26 = smov [#allocation8]   ;;  %s1018_s29 = smov [#allocation9]  }
  0x26   :  { %s48_s28 = sshll.u32 %s1017_s26, 4  ;;  %s62_s30 = sshll.u32 %s1018_s29, 4  ;;  %s49_s28 = int_to_ptr.vmem [resolvable:$true] %s48_s28  ;;  %s1099_s30 = int_to_ptr.vmem [resolvable:$true] %s62_s30 }
  0x27   :  { %s925_s10 = scalar_lea.hbm %s1202_s3, 4096 }
  0x28   :  { %p926_p2 = scmp.ne.s32.totalorder %s1202_s3, %s925_s10  ;;  %p929_p3 = scmp.lt.u32.totalorder %s925_s10, %s1202_s3 }
  0x2a   :  { %p931_p4 = pnand %p929_p3, %p926_p2 }
  0x2c   :  { %934 = shalt.err (!%p931_p4)
}
  0x2d   :  { %s935_s0 = scalar_lea.vmem %s49_s28, 4096  ;;  %p940_p6 = scmp.lt.s32.totalorder %s49_s28, %s49_s28 }
  0x2e   :  { %p936_p5 = scmp.ne.s32.totalorder %s49_s28, %s935_s0  ;;  %p941_p7 = scmp.lt.s32.totalorder %s935_s0, %s935_s0 }
  0x30   :  { %p942_p8 = por %p941_p7, %p940_p6 }
  0x32   :  { %p943_p9 = pnand %p942_p8, %p936_p5 }
  0x34   :  { %946 = shalt.err (!%p943_p9)
}
  0x35   :  { %54 = dma.hbm_to_vmem [thread:$0]  %s1202_s3, 4096, %s49_s28, [#allocation7], %s1015_s13, %s1015_s13, %s1016_s14  }
  0x36   :  { %s947_s20 = scalar_lea.hbm %s1204_s5, 2048 }
  0x37   :  { %p948_p10 = scmp.ne.s32.totalorder %s1204_s5, %s947_s20  ;;  %p951_p11 = scmp.lt.u32.totalorder %s947_s20, %s1204_s5 }
  0x39   :  { %p953_p12 = pnand %p951_p11, %p948_p10 }
  0x3b   :  { %956 = shalt.err (!%p953_p12)
}
  0x3c   :  { %s957_s1 = scalar_lea.vmem %s1099_s30, 2048  ;;  %p962_p0 = scmp.lt.s32.totalorder %s1099_s30, %s1099_s30 }
  0x3d   :  { %p958_p13 = scmp.ne.s32.totalorder %s1099_s30, %s957_s1  ;;  %p963_p1 = scmp.lt.s32.totalorder %s957_s1, %s957_s1 }
  0x3f   :  { %p964_p2 = por %p963_p1, %p962_p0 }
  0x41   :  { %p965_p3 = pnand %p964_p2, %p958_p13 }
  0x43   :  { %968 = shalt.err (!%p965_p3)
}
  0x44   :  { %68 = dma.hbm_to_vmem [thread:$0]  %s1204_s5, 2048, %s1099_s30, [#allocation10], %s1015_s13, %s1015_s13, %s1016_s14  }
  0x45   :  { %s75_s29 = sshll.u32 %s1205_s6, 4  ;;  %s76_s29 = int_to_ptr.vmem [resolvable:$true] %s75_s29 }
  0x46   :  { %s969_s8 = scalar_lea.vmem %s76_s29, 16  ;;  %p974_p5 = scmp.lt.s32.totalorder %s76_s29, %s76_s29 }
  0x47   :  { %p970_p4 = scmp.ne.s32.totalorder %s76_s29, %s969_s8  ;;  %p975_p6 = scmp.lt.s32.totalorder %s969_s8, %s969_s8 }
  0x49   :  { %p976_p7 = por %p975_p6, %p974_p5 }
  0x4b   :  { %p977_p8 = pnand %p976_p7, %p970_p4 }
  0x4d   :  { %980 = shalt.err (!%p977_p8)
}
  0x4e   :  { %s1019_s9 = smov [#allocation11]  }
  0x4f   :  { %78 = dma.vmem_to_smem %s76_s29, 16, %s1019_s9, [#allocation5]  }
  0x50   :  { %1003 = dma.done.wait [#allocation3], 1024  }
  0x51   :  { %1004 = vsyncadd [#allocation3], 4294966272 }
  0x52   :  { %1005 = dma.done.wait [#allocation7], 5120  }
  0x53   :  { %1006 = vsyncadd [#allocation7], 4294962176 }
  0x54   :  { %1007 = dma.done.wait [#allocation10], 2048  }
  0x55   :  { %1008 = vsyncadd [#allocation10], 4294965248 }
  0x56   :  { %1009 = dma.done.wait [#allocation5], 16  }
  0x57   :  { %1010 = vsyncadd [#allocation5], 4294967280 }
  0x58   :  { %94 = sfence }
  0x59   :  { %v821_v0 = vld [vmem:[#allocation6 + $0x4] ss:$8 sps:$4 sm:$0xff]   ;;  %v823_v1 = vld [vmem:[#allocation6] ss:$8 sps:$4 sm:$0xff]   ;;  %v1020_v2 = vmov 0   ;;  %vm168_vm0 = vcmask 523264   ;;  %v118_v53 = vlaneseq }
  0x5a   :  { %213 = vmatprep.mubr.bf16.mxu0 %v1020_v2  ;;  %181 = vmatprep.subr.bf16.mxu0 %v821_v0  ;;  %v824_v3 = vld [vmem:[#allocation6 + $0x14] ss:$8 sps:$4 sm:$0xff]   ;;  %v826_v4 = vld [vmem:[#allocation6 + $0x10] ss:$8 sps:$4 sm:$0xff]   ;;  %v827_v5 = vld [vmem:[#allocation6 + $0x24] ss:$8 sps:$4 sm:$0xff]  }
  0x5b   :  { %182 = vmatpush1.bf16.msra.mxu0 %v823_v1  ;;  %v829_v6 = vld [vmem:[#allocation6 + $0x20] ss:$8 sps:$4 sm:$0xff]   ;;  %v830_v7 = vld [vmem:[#allocation6 + $0x34] ss:$8 sps:$4 sm:$0xff]   ;;  %v832_v8 = vld [vmem:[#allocation6 + $0x30] ss:$8 sps:$4 sm:$0xff]  }
  0x5c   :  { %183 = vmatprep.subr.bf16.mxu0 %v824_v3  ;;  %v835_v9 = vld [vmem:[#allocation8 + $0x4] ss:$8 sps:$4 sm:$0xff]   ;;  %v833_v11 = vld [vmem:[#allocation8] ss:$8 sps:$4 sm:$0xff]   ;;  %v838_v13 = vld [vmem:[#allocation8 + $0x14] ss:$8 sps:$4 sm:$0xff]  }
  0x5d   :  { %v96_v10 = vld [vmem:[#allocation2] sm:$0xff]  ;;  %v97_v12 = vld [vmem:[#allocation2 + $0x8] sm:$0xff]  ;;  %776 = vmatprep.subr.bf16.mxu1 %v835_v9  ;;  %v836_v15 = vld [vmem:[#allocation8 + $0x10] ss:$8 sps:$4 sm:$0xff]   ;;  %v1148_v54 = vshrl.u32 %v118_v53, 7  ;;  %s775_s14 = sld [smem:[#allocation11 + $0x1]] }
  0x5e   :  { %792 = vmatpush1.bf16.msra.mxu1 %v833_v11  ;;  %v104_v14 = vpack.c.bf16 %v97_v12, %v96_v10  ;;  %v841_v16 = vld [vmem:[#allocation8 + $0x24] ss:$8 sps:$4 sm:$0xff]   ;;  %v98_v17 = vld [vmem:[#allocation2 + $0x10] sm:$0xff]  ;;  %v839_v18 = vld [vmem:[#allocation8 + $0x20] ss:$8 sps:$4 sm:$0xff]   ;;  %s1021_s15 = smov [#allocation12]  }
  0x5f   :  { %184 = vmatpush1.bf16.msra.mxu0 %v826_v4  ;;  %777 = vmatprep.subr.bf16.mxu1 %v838_v13  ;;  %v99_v19 = vld [vmem:[#allocation2 + $0x18] sm:$0xff]  ;;  %v847_v23 = vld [vmem:[#allocation8 + $0x44] ss:$8 sps:$4 sm:$0xff]   ;;  %v845_v26 = vld [vmem:[#allocation8 + $0x40] ss:$8 sps:$4 sm:$0xff]   ;;  %v120_v55 = vsub.s32 0, %v1148_v54 }
  0x60   :  { %185 = vmatprep.subr.bf16.mxu0 %v827_v5  ;;  %v844_v20 = vld [vmem:[#allocation8 + $0x34] ss:$8 sps:$4 sm:$0xff]   ;;  %v105_v21 = vpack.c.bf16 %v99_v19, %v98_v17  ;;  %v842_v22 = vld [vmem:[#allocation8 + $0x30] ss:$8 sps:$4 sm:$0xff]   ;;  %v100_v24 = vld [vmem:[#allocation2 + $0x20] sm:$0xff]  ;;  %v124_v57 = vsub.s32 1, %v1148_v54 }
  0x61   :  { %v101_v25 = vld [vmem:[#allocation2 + $0x28] sm:$0xff]  ;;  %v850_v27 = vld [vmem:[#allocation8 + $0x54] ss:$8 sps:$4 sm:$0xff]   ;;  %v848_v29 = vld [vmem:[#allocation8 + $0x50] ss:$8 sps:$4 sm:$0xff]   ;;  %s719_s16 = sshll.u32 %s1021_s15, 4  ;;  %s720_s16 = int_to_ptr.vmem [resolvable:$true] %s719_s16 }
  0x62   :  { %793 = vmatpush1.bf16.msra.mxu1 %v836_v15  ;;  %v106_v28 = vpack.c.bf16 %v101_v25, %v100_v24  ;;  %v853_v30 = vld [vmem:[#allocation8 + $0x64] ss:$8 sps:$4 sm:$0xff]   ;;  %v851_v31 = vld [vmem:[#allocation8 + $0x60] ss:$8 sps:$4 sm:$0xff]   ;;  %v102_v32 = vld [vmem:[#allocation2 + $0x30] sm:$0xff]  ;;  %s981_s0 = scalar_lea.vmem %s720_s16, 16  ;;  %p986_p10 = scmp.lt.s32.totalorder %s720_s16, %s720_s16 }
  0x63   :  { %186 = vmatpush1.bf16.msra.mxu0 %v829_v6  ;;  %778 = vmatprep.subr.bf16.mxu1 %v841_v16  ;;  %v103_v33 = vld [vmem:[#allocation2 + $0x38] sm:$0xff]  ;;  %v859_v37 = vld [vmem:[#allocation8 + $0x84] ss:$8 sps:$4 sm:$0xff]   ;;  %v857_v38 = vld [vmem:[#allocation8 + $0x80] ss:$8 sps:$4 sm:$0xff]   ;;  %p982_p9 = scmp.ne.s32.totalorder %s720_s16, %s981_s0  ;;  %s985_s27 = scalar_lea.vmem %s720_s16, 32 }
  0x64   :  { %187 = vmatprep.subr.bf16.mxu0 %v830_v7  ;;  %v856_v34 = vld [vmem:[#allocation8 + $0x74] ss:$8 sps:$4 sm:$0xff]   ;;  %v107_v35 = vpack.c.bf16 %v103_v33, %v102_v32  ;;  %v854_v36 = vld [vmem:[#allocation8 + $0x70] ss:$8 sps:$4 sm:$0xff]   ;;  %v865_v41 = vld [vmem:[#allocation8 + $0xa4] ss:$8 sps:$4 sm:$0xff]   ;;  %p987_p11 = scmp.lt.s32.totalorder %s985_s27, %s981_s0 }
  0x65   :  { %v862_v39 = vld [vmem:[#allocation8 + $0x94] ss:$8 sps:$4 sm:$0xff]   ;;  %v860_v40 = vld [vmem:[#allocation8 + $0x90] ss:$8 sps:$4 sm:$0xff]   ;;  %v863_v42 = vld [vmem:[#allocation8 + $0xa0] ss:$8 sps:$4 sm:$0xff]  }
  0x66   :  { %794 = vmatpush1.bf16.msra.mxu1 %v839_v18  ;;  %v868_v43 = vld [vmem:[#allocation8 + $0xb4] ss:$8 sps:$4 sm:$0xff]   ;;  %v866_v44 = vld [vmem:[#allocation8 + $0xb0] ss:$8 sps:$4 sm:$0xff]   ;;  %v871_v45 = vld [vmem:[#allocation8 + $0xc4] ss:$8 sps:$4 sm:$0xff]   ;;  %p988_p12 = por %p987_p11, %p986_p10 }
  0x67   :  { %188 = vmatpush1.bf16.msra.mxu0 %v832_v8  ;;  %779 = vmatprep.subr.bf16.mxu1 %v844_v20  ;;  %v869_v46 = vld [vmem:[#allocation8 + $0xc0] ss:$8 sps:$4 sm:$0xff]   ;;  %v874_v47 = vld [vmem:[#allocation8 + $0xd4] ss:$8 sps:$4 sm:$0xff]   ;;  %v872_v48 = vld [vmem:[#allocation8 + $0xd0] ss:$8 sps:$4 sm:$0xff]  }
  0x68   :  { %482 = vmatprep.subr.bf16.mxu0 %v835_v9  ;;  %v877_v49 = vld [vmem:[#allocation8 + $0xe4] ss:$8 sps:$4 sm:$0xff]   ;;  %v875_v50 = vld [vmem:[#allocation8 + $0xe0] ss:$8 sps:$4 sm:$0xff]   ;;  %v880_v51 = vld [vmem:[#allocation8 + $0xf4] ss:$8 sps:$4 sm:$0xff]   ;;  %p989_p13 = pnand %p988_p12, %p982_p9 }
  0x69   :  { %v878_v52 = vld [vmem:[#allocation8 + $0xf0] ss:$8 sps:$4 sm:$0xff]   ;;  %v116_v56 = vld [vmem:[%s1201_s2] sm:$0x3] }
  0x6a   :  { %739 = vmatmul.mubr.msk.bf16.vlgmr.msra.gmra.mrb[0].mxu0 %vm168_vm0, %v104_v14  ;;  %795 = vmatpush1.bf16.msra.mxu1 %v842_v22  ;;  %v121_v58 = vrot.slane %v116_v56, %v120_v55  ;;  %v125_v59 = vrot.slane %v116_v56, %v124_v57 }
  0x6b   :  { %223 = vmatprep.mubr.bf16.mxu0 %v1020_v2  ;;  %483 = vmatpush1.bf16.msra.mxu0 %v833_v11 }
  0x6c   :  { %484 = vmatprep.subr.bf16.mxu0 %v838_v13  ;;  %780 = vmatprep.subr.bf16.mxu1 %v847_v23 }
  0x6e   :  { %796 = vmatpush1.bf16.msra.mxu1 %v845_v26 }
  0x6f   :  { %485 = vmatpush1.bf16.msra.mxu0 %v836_v15  ;;  %781 = vmatprep.subr.bf16.mxu1 %v850_v27 }
  0x70   :  { %486 = vmatprep.subr.bf16.mxu0 %v841_v16 }
  0x72   :  { %740 = vmatmul.mubr.msk.bf16.gmra.mrb[4].mxu0 %vm168_vm0, %v105_v21  ;;  %797 = vmatpush1.bf16.msra.mxu1 %v848_v29 }
  0x73   :  { %233 = vmatprep.mubr.bf16.mxu0 %v1020_v2  ;;  %487 = vmatpush1.bf16.msra.mxu0 %v839_v18 }
  0x74   :  { %488 = vmatprep.subr.bf16.mxu0 %v844_v20  ;;  %782 = vmatprep.subr.bf16.mxu1 %v853_v30 }
  0x76   :  { %798 = vmatpush1.bf16.msra.mxu1 %v851_v31 }
  0x77   :  { %489 = vmatpush1.bf16.msra.mxu0 %v842_v22  ;;  %783 = vmatprep.subr.bf16.mxu1 %v856_v34 }
  0x78   :  { %490 = vmatprep.subr.bf16.mxu0 %v847_v23 }
  0x7a   :  { %741 = vmatmul.mubr.msk.bf16.gmra.mrb[8].mxu0 %vm168_vm0, %v106_v28  ;;  %799 = vmatpush1.bf16.msra.mxu1 %v854_v36 }
  0x7b   :  { %243 = vmatprep.mubr.bf16.mxu0 %v1020_v2  ;;  %491 = vmatpush1.bf16.msra.mxu0 %v845_v26 }
  0x7c   :  { %492 = vmatprep.subr.bf16.mxu0 %v850_v27  ;;  %784 = vmatprep.subr.bf16.mxu1 %v859_v37 }
  0x7e   :  { %800 = vmatpush1.bf16.msra.mxu1 %v857_v38 }
  0x7f   :  { %493 = vmatpush1.bf16.msra.mxu0 %v848_v29  ;;  %785 = vmatprep.subr.bf16.mxu1 %v862_v39 }
  0x80   :  { %494 = vmatprep.subr.bf16.mxu0 %v853_v30 }
  0x82   :  { %742 = vmatmul.mubr.msk.bf16.gmra.mrb[12].mxu0 %vm168_vm0, %v107_v35  ;;  %801 = vmatpush1.bf16.msra.mxu1 %v860_v40 }
  0x83   :  { %495 = vmatpush1.bf16.msra.mxu0 %v851_v31  ;;  %786 = vmatprep.subr.bf16.mxu1 %v865_v41 }
  0x84   :  { %496 = vmatprep.subr.bf16.mxu0 %v856_v34 }
  0x86   :  { %802 = vmatpush1.bf16.msra.mxu1 %v863_v42 }
  0x87   :  { %497 = vmatpush1.bf16.msra.mxu0 %v854_v36  ;;  %787 = vmatprep.subr.bf16.mxu1 %v868_v43 }
  0x88   :  { %498 = vmatprep.subr.bf16.mxu0 %v859_v37 }
  0x8a   :  { %803 = vmatpush1.bf16.msra.mxu1 %v866_v44 }
  0x8b   :  { %499 = vmatpush1.bf16.msra.mxu0 %v857_v38  ;;  %788 = vmatprep.subr.bf16.mxu1 %v871_v45 }
  0x8c   :  { %500 = vmatprep.subr.bf16.mxu0 %v862_v39 }
  0x8e   :  { %804 = vmatpush1.bf16.msra.mxu1 %v869_v46 }
  0x8f   :  { %501 = vmatpush1.bf16.msra.mxu0 %v860_v40  ;;  %789 = vmatprep.subr.bf16.mxu1 %v874_v47 }
  0x90   :  { %502 = vmatprep.subr.bf16.mxu0 %v865_v41 }
  0x92   :  { %805 = vmatpush1.bf16.msra.mxu1 %v872_v48 }
  0x93   :  { %503 = vmatpush1.bf16.msra.mxu0 %v863_v42  ;;  %790 = vmatprep.subr.bf16.mxu1 %v877_v49 }
  0x94   :  { %504 = vmatprep.subr.bf16.mxu0 %v868_v43 }
  0x96   :  { %806 = vmatpush1.bf16.msra.mxu1 %v875_v50 }
  0x97   :  { %505 = vmatpush1.bf16.msra.mxu0 %v866_v44  ;;  %791 = vmatprep.subr.bf16.mxu1 %v880_v51 }
  0x98   :  { %506 = vmatprep.subr.bf16.mxu0 %v871_v45 }
  0x9a   :  { %807 = vmatpush1.bf16.msra.mxu1 %v878_v52 }
  0x9b   :  { %507 = vmatpush1.bf16.msra.mxu0 %v869_v46 }
  0x9c   :  { %508 = vmatprep.subr.bf16.mxu0 %v874_v47 }
  0x9f   :  { %509 = vmatpush1.bf16.msra.mxu0 %v872_v48 }
  0xa0   :  { %510 = vmatprep.subr.bf16.mxu0 %v877_v49 }
  0xa3   :  { %511 = vmatpush1.bf16.msra.mxu0 %v875_v50 }
  0xa4   :  { %512 = vmatprep.subr.bf16.mxu0 %v880_v51 }
  0xa7   :  { %513 = vmatpush1.bf16.msra.mxu0 %v878_v52  ;;  %v310_v52 = vld [vmem:[%s1203_s4] sm:$0x3]  ;;  %s635_s4 = sld [smem:[#allocation11]] }
  0xa8   :  { %v1164_v56 = vrot.slane %v310_v52, %v120_v55 }
 0x13d   :  { %v215_v60 = vpop.f32.mrb[0].mxu0 }
 0x13e   :  { %v216_v61 = vadd.f32 %v215_v60, %v121_v58  ;;  %v217_v62 = vpop.f32.mrb[1].mxu0  ;;  %v638_v60 = vld [vmem:[#allocation9 + $0x40] sm:$0xff] }
 0x13f   :  { %v218_v63 = vadd.f32 %v217_v62, %v125_v59  ;;  %v219_v0 = vpop.f32.mrb[2].mxu0  ;;  %v572_v62 = vld [vmem:[#allocation9 + $0x8] sm:$0xff] }
 0x140   :  { %v220_v1 = vadd.f32 %v219_v0, %v121_v58  ;;  %v221_v2 = vpop.f32.mrb[3].mxu0  ;;  %v254_v4 = vmax.f32 %v216_v61, 0.0 }
 0x141   :  { %v222_v3 = vadd.f32 %v221_v2, %v125_v59  ;;  %v255_v6 = vmax.f32 %v218_v63, 0.0  ;;  %v639_v63 = vld [vmem:[#allocation9 + $0x48] sm:$0xff]  ;;  %v646_v2 = vunpack.c.l.bf16 %v638_v60 }
 0x142   :  { %v256_v5 = vmax.f32 %v220_v1, 0.0  ;;  %v648_v54 = vunpack.c.l.bf16 %v639_v63 }
 0x143   :  { %v257_v7 = vmax.f32 %v222_v3, 0.0 }
 0x144   :  { %v270_v8 = vpack.c.bf16 %v256_v5, %v254_v4 }
 0x145   :  { %v271_v9 = vpack.c.bf16 %v257_v7, %v255_v6  ;;  %v225_v10 = vpop.f32.mrb[4].mxu0  ;;  %v647_v6 = vunpack.c.h.bf16 %v638_v60 }
 0x146   :  { %v226_v11 = vadd.f32 %v225_v10, %v121_v58  ;;  %v227_v12 = vpop.f32.mrb[5].mxu0 }
 0x147   :  { %v228_v13 = vadd.f32 %v227_v12, %v125_v59  ;;  %v229_v14 = vpop.f32.mrb[6].mxu0  ;;  %514 = vmatprep.mubr.bf16.mxu0 %v271_v9  ;;  %v581_v9 = vunpack.c.l.bf16 %v572_v62 }
 0x148   :  { %v230_v15 = vadd.f32 %v229_v14, %v121_v58  ;;  %v231_v16 = vpop.f32.mrb[7].mxu0  ;;  %515 = vmatmul.mubr.bf16.vlgmr.msra.gmra.mrb[16].mxu0 %v270_v8  ;;  %v258_v18 = vmax.f32 %v226_v11, 0.0 }
 0x149   :  { %v232_v17 = vadd.f32 %v231_v16, %v125_v59  ;;  %v259_v20 = vmax.f32 %v228_v13, 0.0  ;;  %v573_v16 = vld [vmem:[#allocation9 + $0x10] sm:$0xff] }
 0x14a   :  { %v260_v19 = vmax.f32 %v230_v15, 0.0  ;;  %v582_v15 = vunpack.c.h.bf16 %v572_v62  ;;  %v576_v62 = vld [vmem:[#allocation9 + $0x28] sm:$0xff] }
 0x14b   :  { %v261_v21 = vmax.f32 %v232_v17, 0.0  ;;  %v640_v17 = vld [vmem:[#allocation9 + $0x50] sm:$0xff] }
 0x14c   :  { %v272_v22 = vpack.c.bf16 %v260_v19, %v258_v18 }
 0x14d   :  { %v235_v23 = vpop.f32.mrb[8].mxu0  ;;  %v273_v24 = vpack.c.bf16 %v261_v21, %v259_v20  ;;  %v649_v21 = vunpack.c.h.bf16 %v639_v63 }
 0x14e   :  { %v236_v25 = vadd.f32 %v235_v23, %v121_v58  ;;  %v237_v26 = vpop.f32.mrb[9].mxu0 }
 0x14f   :  { %v238_v27 = vadd.f32 %v237_v26, %v125_v59  ;;  %v239_v28 = vpop.f32.mrb[10].mxu0  ;;  %524 = vmatprep.mubr.bf16.mxu1 %v273_v24 }
 0x150   :  { %v240_v29 = vadd.f32 %v239_v28, %v121_v58  ;;  %v241_v30 = vpop.f32.mrb[11].mxu0  ;;  %525 = vmatmul.mubr.bf16.vlgmr.msra.gmra.mrb[0].mxu1 %v272_v22  ;;  %v262_v32 = vmax.f32 %v236_v25, 0.0  ;;  %v650_v28 = vunpack.c.l.bf16 %v640_v17 }
 0x151   :  { %v242_v31 = vadd.f32 %v241_v30, %v125_v59  ;;  %v263_v34 = vmax.f32 %v238_v27, 0.0  ;;  %v583_v27 = vunpack.c.l.bf16 %v573_v16  ;;  %v641_v30 = vld [vmem:[#allocation9 + $0x58] sm:$0xff] }
 0x152   :  { %v264_v33 = vmax.f32 %v240_v29, 0.0  ;;  %v574_v29 = vld [vmem:[#allocation9 + $0x18] sm:$0xff] }
 0x153   :  { %v265_v35 = vmax.f32 %v242_v31, 0.0 }
 0x154   :  { %v274_v36 = vpack.c.bf16 %v264_v33, %v262_v32 }
 0x155   :  { %v275_v37 = vpack.c.bf16 %v265_v35, %v263_v34  ;;  %v245_v38 = vpop.f32.mrb[12].mxu0  ;;  %v584_v34 = vunpack.c.h.bf16 %v573_v16  ;;  %v651_v35 = vunpack.c.h.bf16 %v640_v17 }
 0x156   :  { %v246_v39 = vadd.f32 %v245_v38, %v121_v58  ;;  %v247_v40 = vpop.f32.mrb[13].mxu0 }
 0x157   :  { %v248_v41 = vadd.f32 %v247_v40, %v125_v59  ;;  %v249_v42 = vpop.f32.mrb[14].mxu0  ;;  %534 = vmatprep.mubr.bf16.mxu1 %v275_v37 }
 0x158   :  { %v250_v43 = vadd.f32 %v249_v42, %v121_v58  ;;  %v251_v44 = vpop.f32.mrb[15].mxu0  ;;  %535 = vmatmul.mubr.bf16.gmra.mrb[4].mxu1 %v274_v36  ;;  %v266_v46 = vmax.f32 %v246_v39, 0.0  ;;  %v571_v58 = vld [vmem:[#allocation9] sm:$0xff] }
 0x159   :  { %v252_v45 = vadd.f32 %v251_v44, %v125_v59  ;;  %v267_v48 = vmax.f32 %v248_v41, 0.0  ;;  %v1168_v59 = vrot.slane %v310_v52, %v124_v57  ;;  %v579_v1 = vunpack.c.l.bf16 %v571_v58 }
 0x15a   :  { %v268_v47 = vmax.f32 %v250_v43, 0.0  ;;  %v580_v5 = vunpack.c.h.bf16 %v571_v58  ;;  %v585_v43 = vunpack.c.l.bf16 %v574_v29  ;;  %v652_v44 = vunpack.c.l.bf16 %v641_v30 }
 0x15b   :  { %v269_v49 = vmax.f32 %v252_v45, 0.0 }
 0x15c   :  { %v276_v50 = vpack.c.bf16 %v268_v47, %v266_v46 }
 0x15d   :  { %v277_v51 = vpack.c.bf16 %v269_v49, %v267_v48 }
 0x15f   :  { %544 = vmatprep.mubr.bf16.mxu1 %v277_v51  ;;  %v642_v51 = vld [vmem:[#allocation9 + $0x60] sm:$0xff] }
 0x160   :  { %545 = vmatmul.mubr.bf16.gmra.mrb[8].mxu1 %v276_v50  ;;  %v575_v50 = vld [vmem:[#allocation9 + $0x20] sm:$0xff] }
 0x21b   :  { %v516_v61 = vpop.f32.mrb[16].mxu0 }
 0x21c   :  { %v517_v0 = vadd.f32 %v516_v61, %v1164_v56  ;;  %v518_v3 = vpop.f32.mrb[17].mxu0  ;;  %v586_v61 = vunpack.c.h.bf16 %v574_v29 }
 0x21d   :  { %v519_v4 = vadd.f32 %v518_v3, %v1168_v59  ;;  %v520_v55 = vpop.f32.mrb[18].mxu0 }
 0x21e   :  { %v555_v7 = vmax.f32 %v517_v0, 0.0  ;;  %v521_v8 = vadd.f32 %v520_v55, %v1164_v56  ;;  %v522_v57 = vpop.f32.mrb[19].mxu0  ;;  %v643_v55 = vld [vmem:[#allocation9 + $0x68] sm:$0xff] }
 0x21f   :  { %v556_v10 = vmax.f32 %v519_v4, 0.0  ;;  %v523_v11 = vadd.f32 %v522_v57, %v1168_v59  ;;  %v589_v57 = vunpack.c.l.bf16 %v576_v62 }
 0x220   :  { %v595_v12 = vmul.f32 %v579_v1, %v555_v7  ;;  %v662_v13 = vmul.f32 %v646_v2, %v555_v7  ;;  %v557_v14 = vmax.f32 %v521_v8, 0.0  ;;  %v653_v2 = vunpack.c.h.bf16 %v641_v30 }
 0x221   :  { %v596_v18 = vmul.f32 %v580_v5, %v556_v10  ;;  %v663_v19 = vmul.f32 %v647_v6, %v556_v10  ;;  %v558_v20 = vmax.f32 %v523_v11, 0.0  ;;  %v587_v5 = vunpack.c.l.bf16 %v575_v50 }
 0x222   :  { %v597_v22 = vmul.f32 %v581_v9, %v557_v14  ;;  %v664_v23 = vmul.f32 %v648_v54, %v557_v14  ;;  %v654_v6 = vunpack.c.l.bf16 %v642_v51  ;;  %v588_v9 = vunpack.c.h.bf16 %v575_v50 }
 0x223   :  { %v611_v24 = vadd.f32 %v596_v18, %v595_v12  ;;  %v678_v25 = vadd.f32 %v663_v19, %v662_v13  ;;  %v526_v26 = vpop.f32.mrb[0].mxu1  ;;  %v598_v31 = vmul.f32 %v582_v15, %v558_v20  ;;  %v665_v38 = vmul.f32 %v649_v21, %v558_v20 }
 0x224   :  { %v527_v32 = vadd.f32 %v526_v26, %v1164_v56  ;;  %v528_v33 = vpop.f32.mrb[1].mxu1  ;;  %v655_v54 = vunpack.c.h.bf16 %v642_v51  ;;  %v656_v19 = vunpack.c.l.bf16 %v643_v55  ;;  %v578_v51 = vld [vmem:[#allocation9 + $0x38] sm:$0xff] }
 0x225   :  { %v612_v36 = vadd.f32 %v611_v24, %v597_v22  ;;  %v679_v37 = vadd.f32 %v678_v25, %v664_v23  ;;  %v529_v39 = vadd.f32 %v528_v33, %v1168_v59  ;;  %v530_v40 = vpop.f32.mrb[2].mxu1  ;;  %v577_v33 = vld [vmem:[#allocation9 + $0x30] sm:$0xff] }
 0x226   :  { %v559_v41 = vmax.f32 %v527_v32, 0.0  ;;  %v531_v42 = vadd.f32 %v530_v40, %v1164_v56  ;;  %v532_v45 = vpop.f32.mrb[3].mxu1 }
 0x227   :  { %v613_v46 = vadd.f32 %v612_v36, %v598_v31  ;;  %v680_v47 = vadd.f32 %v679_v37, %v665_v38  ;;  %v560_v48 = vmax.f32 %v529_v39, 0.0  ;;  %v533_v49 = vadd.f32 %v532_v45, %v1168_v59 }
 0x228   :  { %v599_v52 = vmul.f32 %v583_v27, %v559_v41  ;;  %v666_v58 = vmul.f32 %v650_v28, %v559_v41  ;;  %v561_v60 = vmax.f32 %v531_v42, 0.0  ;;  %v590_v27 = vunpack.c.h.bf16 %v576_v62 }
 0x229   :  { %v600_v63 = vmul.f32 %v584_v34, %v560_v48  ;;  %v667_v0 = vmul.f32 %v651_v35, %v560_v48  ;;  %v562_v1 = vmax.f32 %v533_v49, 0.0  ;;  %v657_v28 = vunpack.c.h.bf16 %v643_v55  ;;  %v644_v34 = vld [vmem:[#allocation9 + $0x70] sm:$0xff] }
 0x22a   :  { %v614_v3 = vadd.f32 %v613_v46, %v599_v52  ;;  %v681_v4 = vadd.f32 %v680_v47, %v666_v58  ;;  %v601_v7 = vmul.f32 %v585_v43, %v561_v60  ;;  %v668_v12 = vmul.f32 %v652_v44, %v561_v60  ;;  %v645_v52 = vld [vmem:[#allocation9 + $0x78] sm:$0xff] }
 0x22b   :  { %v536_v8 = vpop.f32.mrb[4].mxu1  ;;  %v602_v15 = vmul.f32 %v586_v61, %v562_v1  ;;  %v669_v16 = vmul.f32 %v653_v2, %v562_v1  ;;  %v591_v43 = vunpack.c.l.bf16 %v577_v33  ;;  %v658_v44 = vunpack.c.l.bf16 %v644_v34 }
 0x22c   :  { %v615_v10 = vadd.f32 %v614_v3, %v600_v63  ;;  %v682_v11 = vadd.f32 %v681_v4, %v667_v0  ;;  %v537_v13 = vadd.f32 %v536_v8, %v1164_v56  ;;  %v538_v14 = vpop.f32.mrb[5].mxu1  ;;  %v592_v45 = vunpack.c.h.bf16 %v577_v33 }
 0x22d   :  { %v539_v17 = vadd.f32 %v538_v14, %v1168_v59  ;;  %v540_v18 = vpop.f32.mrb[6].mxu1  ;;  %v659_v62 = vunpack.c.h.bf16 %v644_v34  ;;  %v660_v55 = vunpack.c.l.bf16 %v645_v52 }
 0x22e   :  { %v616_v20 = vadd.f32 %v615_v10, %v601_v7  ;;  %v683_v21 = vadd.f32 %v682_v11, %v668_v12  ;;  %v563_v22 = vmax.f32 %v537_v13, 0.0  ;;  %v541_v23 = vadd.f32 %v540_v18, %v1164_v56  ;;  %v542_v24 = vpop.f32.mrb[7].mxu1 }
 0x22f   :  { %v564_v25 = vmax.f32 %v539_v17, 0.0  ;;  %v543_v26 = vadd.f32 %v542_v24, %v1168_v59  ;;  %v661_v13 = vunpack.c.h.bf16 %v645_v52  ;;  %v594_v17 = vunpack.c.h.bf16 %v578_v51 }
 0x230   :  { %v617_v29 = vadd.f32 %v616_v20, %v602_v15  ;;  %v684_v30 = vadd.f32 %v683_v21, %v669_v16  ;;  %v603_v31 = vmul.f32 %v587_v5, %v563_v22  ;;  %v670_v32 = vmul.f32 %v654_v6, %v563_v22 }
 0x231   :  { %v604_v35 = vmul.f32 %v588_v9, %v564_v25  ;;  %v671_v36 = vmul.f32 %v655_v54, %v564_v25  ;;  %v565_v37 = vmax.f32 %v541_v23, 0.0  ;;  %v566_v38 = vmax.f32 %v543_v26, 0.0 }
 0x232   :  { %v618_v39 = vadd.f32 %v617_v29, %v603_v31  ;;  %v685_v40 = vadd.f32 %v684_v30, %v670_v32  ;;  %v593_v6 = vunpack.c.l.bf16 %v578_v51 }
 0x233   :  { %v605_v41 = vmul.f32 %v589_v57, %v565_v37  ;;  %v546_v42 = vpop.f32.mrb[8].mxu1  ;;  %v672_v48 = vmul.f32 %v656_v19, %v565_v37  ;;  %v606_v58 = vmul.f32 %v590_v27, %v566_v38  ;;  %v673_v60 = vmul.f32 %v657_v28, %v566_v38 }
 0x234   :  { %v619_v46 = vadd.f32 %v618_v39, %v604_v35  ;;  %v686_v47 = vadd.f32 %v685_v40, %v671_v36  ;;  %v547_v49 = vadd.f32 %v546_v42, %v1164_v56  ;;  %v548_v50 = vpop.f32.mrb[9].mxu1  ;;  %v705_v40 = vand.u32 127, %v118_v53 }
 0x235   :  { %v549_v61 = vadd.f32 %v548_v50, %v1168_v59  ;;  %v550_v63 = vpop.f32.mrb[10].mxu1 }
 0x236   :  { %v620_v0 = vadd.f32 %v619_v46, %v605_v41  ;;  %v687_v1 = vadd.f32 %v686_v47, %v672_v48  ;;  %v567_v2 = vmax.f32 %v547_v49, 0.0  ;;  %v551_v3 = vadd.f32 %v550_v63, %v1164_v56  ;;  %v552_v4 = vpop.f32.mrb[11].mxu1 }
 0x237   :  { %v568_v5 = vmax.f32 %v549_v61, 0.0  ;;  %v553_v7 = vadd.f32 %v552_v4, %v1168_v59  ;;  %vm707_vm1 = vcmp.eq.s32.totalorder %v705_v40, 1  ;;  %vm706_vm2 = vcmp.eq.s32.totalorder %v705_v40, 0 }
 0x238   :  { %v621_v8 = vadd.f32 %v620_v0, %v606_v58  ;;  %v688_v9 = vadd.f32 %v687_v1, %v673_v60  ;;  %v607_v54 = vmul.f32 %v591_v43, %v567_v2  ;;  %v674_v57 = vmul.f32 %v658_v44, %v567_v2 }
 0x239   :  { %v608_v10 = vmul.f32 %v592_v45, %v568_v5  ;;  %v675_v11 = vmul.f32 %v659_v62, %v568_v5  ;;  %v569_v12 = vmax.f32 %v551_v3, 0.0  ;;  %v570_v16 = vmax.f32 %v553_v7, 0.0 }
 0x23a   :  { %v622_v14 = vadd.f32 %v621_v8, %v607_v54  ;;  %v689_v15 = vadd.f32 %v688_v9, %v674_v57 }
 0x23b   :  { %v609_v56 = vmul.f32 %v593_v6, %v569_v12  ;;  %v676_v19 = vmul.f32 %v660_v55, %v569_v12  ;;  %v677_v21 = vmul.f32 %v661_v13, %v570_v16  ;;  %v610_v22 = vmul.f32 %v594_v17, %v570_v16 }
 0x23c   :  { %v690_v18 = vadd.f32 %v689_v15, %v675_v11  ;;  %v623_v20 = vadd.f32 %v622_v14, %v608_v10 }
 0x23e   :  { %v624_v23 = vadd.f32 %v623_v20, %v609_v56  ;;  %v691_v59 = vadd.f32 %v690_v18, %v676_v19 }
 0x240   :  { %v625_v24 = vadd.f32 %v624_v23, %v610_v22  ;;  %v692_v25 = vadd.f32 %v691_v59, %v677_v21 }
 0x242   :  { %626 = vadd.xlane.f32.xlu0 %v625_v24 }
 0x246   :  { %693 = vadd.xlane.f32.xlu0 %v692_v25 }
 0x2cf   :  { %v627_v26 = vpop.xlane.xlu0 %626 }
 0x2d0   :  { %v628_v27 = vrot.slane %v627_v26, 4 }
 0x2d2   :  { %v629_v28 = vadd.f32 %v628_v27, %v627_v26 }
 0x2d3   :  { %v694_v29 = vpop.xlane.xlu0 %693 }
 0x2d4   :  { %v630_v30 = vrot.slane %v629_v28, 2  ;;  %v695_v31 = vrot.slane %v694_v29, 4 }
 0x2d6   :  { %v696_v32 = vadd.f32 %v695_v31, %v694_v29  ;;  %v631_v33 = vadd.f32 %v630_v30, %v629_v28 }
 0x2d8   :  { %v697_v34 = vrot.slane %v696_v32, 2  ;;  %v632_v35 = vrot.slane %v631_v33, 1 }
 0x2da   :  { %v698_v36 = vadd.f32 %v697_v34, %v696_v32  ;;  %v633_v37 = vadd.f32 %v632_v35, %v631_v33 }
 0x2dc   :  { %808 = vpush %v633_v37  ;;  %v699_v38 = vrot.slane %v698_v36, 1 }
 0x2de   :  { %v700_v39 = vadd.f32 %v699_v38, %v698_v36 }
 0x2e0   :  { %810 = vpush %v700_v39 }
 0x30d   :  { %s809_s30 = spop %808 }
 0x30e   :  { %s636_s10 = sadd.f32 %s809_s30, %s635_s4 }
 0x310   :  { %v710_v42 = vstv %s636_s10 }
 0x311   :  { %s811_s11 = spop %810 }
 0x312   :  { %s703_s12 = sadd.f32 %s811_s11, %s775_s14 }
 0x314   :  { %v708_v41 = vstv %s703_s12 }
 0x315   :  { %v709_v43 = vsel %vm707_vm1, %v708_v41, 0.0 }
 0x316   :  { %v711_v44 = vsel %vm706_vm2, %v710_v42, %v709_v43 }
 0x317   :  { %712 = vst [vmem:[#allocation12] sm:$0x1] %v711_v44 }
 0x318   :  { %992 = shalt.err (!%p989_p13)
}
 0x319   :  { %s993_s19 = scalar_lea.hbm %s1206_s7, 16 }
 0x31a   :  { %p994_p0 = scmp.ne.s32.totalorder %s1206_s7, %s993_s19  ;;  %p997_p1 = scmp.lt.u32.totalorder %s993_s19, %s1206_s7 }
 0x31c   :  { %p999_p2 = pnand %p997_p1, %p994_p0 }
 0x31e   :  { %1002 = shalt.err (!%p999_p2)
}
 0x31f   :  { %722 = dma.vmem_to_hbm [thread:$0]  %s720_s16, 16, %s1206_s7, [#allocation4]  }
 0x320   :  { %1011 = dma.done.wait [#allocation4], 16  }
 0x321   :  { %1012 = vsyncadd [#allocation4], 4294967280 }
 0x322   :  { %726 = vsyncpa [#allocation3], 1 }
 0x323   :  { %727 = vsyncpa [#allocation7], 1 }
 0x324   :  { %728 = vsyncpa [#allocation10], 1 }
 0x325   :  { %729 = vsyncpa [#allocation4], 1 }
 0x326   :  { %730 = vsyncpa [#allocation5], 1 }

</bundles_post_ra>
